<compile_context>
chip_gen: v5e
topology: v5e:2x2
jax: 0.10.0
libtpu: 0.0.40
codegen_flags: <defaults>
</compile_context>

<pallas_src>
import jax
import jax.numpy as jnp
from jax import lax
from jax.experimental import pallas as pl
from jax.experimental.pallas import tpu as pltpu

K_CONST = 0.5
B_CONST = 0.2
H_CONST = 0.1
STATE_DIM = 2
OUT_DIM = 1

LANE = 128
SUBLANE = 8
MAX_TILE_B = 65536      # lanes per batch tile in the rollout kernel ((2, 65536) f32 = 512 KiB)
MAX_TILE_ROWS = 2048    # (2048, 128) f32 = 1 MiB per block in the single-step kernel


def _round_up(n, m):
    return ((n + m - 1) // m) * m


def _cdiv(a, b):
    return (a + b - 1) // b


# ---------------------------------------------------------------------------
# shared dynamics (lane-dense layout: state on sublanes, batch on lanes)
# ---------------------------------------------------------------------------
def _dyn_step(x, w):
    """x_next = x + h * (x @ A^T) + w with A = [[0,1],[-k,-b]] constant-folded
    into VPU elementwise math.  x, w: (STATE_DIM, bt)."""
    x0 = x[0:1, :]
    x1 = x[1:2, :]
    xn0 = x0 + H_CONST * x1
    xn1 = x1 - H_CONST * (K_CONST * x0 + B_CONST * x1)
    return jnp.concatenate([xn0, xn1], axis=0) + w   # one full-tile value, one store


# ---------------------------------------------------------------------------
# fused rollout kernel (the main deliverable): state resident in VMEM across T
# ---------------------------------------------------------------------------
def _rollout_kernel(xinit_ref, w_ref, v_ref, xlog_ref, ylog_ref, s_ref):
    # xinit_ref, w_ref, xlog_ref, s_ref : (STATE_DIM, bt); v_ref, ylog_ref : (OUT_DIM, bt)
    t = pl.program_id(1)
    w = w_ref[...]
    v = v_ref[...]

    @pl.when(t == 0)
    def _():
        x0 = xinit_ref[...]
        # _sim quirk: the t==0 log entries come from x_init directly; the first
        # dynamics step (with w[0]) only seeds the state carried into t==1.
        xlog_ref[...] = x0 + w
        ylog_ref[...] = x0[0:1, :] + v          # y = C @ x  ->  first state row
        s_ref[...] = _dyn_step(x0, w)

    @pl.when(t > 0)
    def _():
        xn = _dyn_step(s_ref[...], w)
        s_ref[...] = xn                          # state stays resident in VMEM
        xlog_ref[...] = xn
        ylog_ref[...] = xn[0:1, :] + v


def _batch_tiling(bsz):
    b_pad = _round_up(max(bsz, 1), LANE)
    n_tiles = max(1, _cdiv(b_pad, MAX_TILE_B))
    if n_tiles < 2 and b_pad >= 2 * LANE:
        n_tiles = 2     # keep >= 2 batch tiles so v7x megacore uses both TensorCores
    b_tile = _round_up(_cdiv(b_pad, n_tiles), LANE)
    b_pad = _round_up(b_pad, b_tile)
    return b_tile, b_pad


def second_order_rollout(x_init, w_log, v_log, T):
    """Fused equivalent of SecondOrderSystem.rollout()/_sim().
    x_init: (B,1,STATE_DIM), w_log: (B,T,STATE_DIM), v_log: (B,T,OUT_DIM)
    returns x_log (B,T,STATE_DIM), y_log (B,T,OUT_DIM)."""
    bsz = x_init.shape[0]
    assert w_log.shape == (bsz, T, STATE_DIM)
    assert v_log.shape == (bsz, T, OUT_DIM)
    assert x_init.shape == w_log[:, 0:1, :].shape

    # One-time layout change for the whole rollout: batch on the 128-lane axis.
    xinit_t = x_init.reshape(bsz, STATE_DIM).astype(jnp.float32).T        # (2, B)
    w_t = jnp.transpose(w_log.astype(jnp.float32), (1, 2, 0))             # (T, 2, B)
    v_t = jnp.transpose(v_log.astype(jnp.float32), (1, 2, 0))             # (T, 1, B)

    b_tile, b_pad = _batch_tiling(bsz)
    if b_pad != bsz:
        pad = b_pad - bsz
        xinit_t = jnp.pad(xinit_t, ((0, 0), (0, pad)))
        w_t = jnp.pad(w_t, ((0, 0), (0, 0), (0, pad)))
        v_t = jnp.pad(v_t, ((0, 0), (0, 0), (0, pad)))

    cost = pl.CostEstimate(flops=int(8 * T * b_pad), transcendentals=0,
                           bytes_accessed=int(4 * (2 * b_pad + 6 * T * b_pad)))

    xlog_t, ylog_t = pl.pallas_call(
        _rollout_kernel,
        out_shape=(
            jax.ShapeDtypeStruct((T, STATE_DIM, b_pad), jnp.float32),
            jax.ShapeDtypeStruct((T, OUT_DIM, b_pad), jnp.float32),
        ),
        grid=(b_pad // b_tile, T),
        in_specs=[
            pl.BlockSpec((STATE_DIM, b_tile), lambda i, t: (0, i)),       # fetched once/tile
            pl.BlockSpec((None, STATE_DIM, b_tile), lambda i, t: (t, 0, i)),
            pl.BlockSpec((None, OUT_DIM, b_tile), lambda i, t: (t, 0, i)),
        ],
        out_specs=(
            pl.BlockSpec((None, STATE_DIM, b_tile), lambda i, t: (t, 0, i)),
            pl.BlockSpec((None, OUT_DIM, b_tile), lambda i, t: (t, 0, i)),
        ),
        scratch_shapes=[pltpu.VMEM((STATE_DIM, b_tile), jnp.float32)],
        compiler_params=pltpu.CompilerParams(
            dimension_semantics=("parallel", "arbitrary")),
        cost_estimate=cost,
    )(xinit_t, w_t, v_t)

    x_log = jnp.transpose(xlog_t[:, :, :bsz], (2, 0, 1))                  # (B, T, 2)
    y_log = jnp.transpose(ylog_t[:, :, :bsz], (2, 0, 1))                  # (B, T, 1)
    return x_log, y_log


# ---------------------------------------------------------------------------
# single-step forward (transpose-free interleaved-lane layout, pltpu.roll)
# ---------------------------------------------------------------------------
def _step_kernel(x_ref, w_ref, xn_ref):
    # Lanes hold [x0(b), x1(b), x0(b+1), x1(b+1), ...] per 128-lane row.
    x = x_ref[...]                                           # (row_tile, 128)
    lane = lax.broadcasted_iota(jnp.int32, x.shape, 1)
    is_even = (lane % 2) == 0
    prv = pltpu.roll(x, 1, axis=1)                           # prv[i] = x[i-1]
    nxt = pltpu.roll(x, LANE - 1, axis=1)                    # nxt[i] = x[i+1]
    partner = jnp.where(is_even, nxt, prv)                   # even lane -> x1, odd lane -> x0
    upd = jnp.where(is_even,
                    x + H_CONST * partner,                                # x0 + h*x1
                    x - H_CONST * (K_CONST * partner + B_CONST * x))      # x1 - h*(k*x0 + b*x1)
    xn_ref[...] = upd + w_ref[...]


def _row_tiling(rows):
    n_tiles = max(1, _cdiv(rows, MAX_TILE_ROWS))
    if n_tiles < 2 and rows >= 2 * SUBLANE:
        n_tiles = 2     # feed both v7x TensorCores when there is enough work
    row_tile = _round_up(_cdiv(rows, n_tiles), SUBLANE)
    rows_pad = _round_up(rows, row_tile)
    return row_tile, rows_pad


def second_order_forward(t, x, w):
    """Matches SecondOrderSystem.forward: x_next = x + h*(x @ A^T) + w."""
    del t  # time index unused by the dynamics (matches the PyTorch module)
    bsz = x.shape[0]
    n = bsz * STATE_DIM
    n_pad = _round_up(n, SUBLANE * LANE)
    xf = x.reshape(n).astype(jnp.float32)
    wf = w.reshape(n).astype(jnp.float32)
    if n_pad != n:
        xf = jnp.pad(xf, (0, n_pad - n))
        wf = jnp.pad(wf, (0, n_pad - n))
    rows = n_pad // LANE
    row_tile, rows_pad = _row_tiling(rows)
    x2 = xf.reshape(rows, LANE)
    w2 = wf.reshape(rows, LANE)
    if rows_pad != rows:
        x2 = jnp.pad(x2, ((0, rows_pad - rows), (0, 0)))
        w2 = jnp.pad(w2, ((0, rows_pad - rows), (0, 0)))

    cost = pl.CostEstimate(flops=int(6 * rows_pad * LANE), transcendentals=0,
                           bytes_accessed=int(12 * rows_pad * LANE))
    xn = pl.pallas_call(
        _step_kernel,
        out_shape=jax.ShapeDtypeStruct((rows_pad, LANE), jnp.float32),
        grid=(rows_pad // row_tile,),
        in_specs=[pl.BlockSpec((row_tile, LANE), lambda i: (i, 0)),
                  pl.BlockSpec((row_tile, LANE), lambda i: (i, 0))],
        out_specs=pl.BlockSpec((row_tile, LANE), lambda i: (i, 0)),
        compiler_params=pltpu.CompilerParams(dimension_semantics=("parallel",)),
        cost_estimate=cost,
    )(x2, w2)

    return xn.reshape(rows_pad * LANE)[:n].reshape(bsz, 1, STATE_DIM)


def second_order_output(x):
    """y = x @ C^T with C = [[1, 0]] is the first state component — a pure slice."""
    bsz = x.shape[0]
    return x.reshape(bsz, 1, STATE_DIM)[:, :, 0:1].astype(jnp.float32)


# ---------------------------------------------------------------------------
if __name__ == "__main__":
    key = jax.random.PRNGKey(0)
    kx, kw, kv = jax.random.split(key, 3)

    batch, T = 2, 8
    x_init = jax.random.normal(kx, (batch, 1, STATE_DIM), dtype=jnp.float32)
    w_log = 0.01 * jax.random.normal(kw, (batch, T, STATE_DIM), dtype=jnp.float32)
    v_log = 0.01 * jax.random.normal(kv, (batch, T, OUT_DIM), dtype=jnp.float32)

    A = jnp.array([[0.0, 1.0], [-K_CONST, -B_CONST]], dtype=jnp.float32)
    C = jnp.array([[1.0, 0.0]], dtype=jnp.float32)
    hp = jax.lax.Precision.HIGHEST

    def ref_step(x, w):
        return x + H_CONST * jnp.einsum('bij,kj->bik', x, A, precision=hp) + w

    def ref_out(x):
        return jnp.einsum('bij,kj->bik', x, C, precision=hp)

    # --- single-step forward kernel ---
    x1 = second_order_forward(0, x_init, w_log[:, 0:1, :])
    jax.block_until_ready(x1)
    ref_x1 = ref_step(x_init, w_log[:, 0:1, :])
    assert jnp.allclose(x1, ref_x1, atol=1e-5, rtol=1e-5), "forward mismatch"
    assert jnp.allclose(second_order_output(x1), ref_out(x1), atol=1e-6), "output mismatch"

    # --- fused rollout kernel ---
    x_log, y_log = second_order_rollout(x_init, w_log, v_log, T)
    jax.block_until_ready((x_log, y_log))

    # pure-JAX reference mirroring SecondOrderSystem._sim exactly (including its
    # quirk that the t==0 log entries come from x_init, not from a dynamics step)
    x = x_init
    ref_x_log = x + w_log[:, 0:1, :]
    ref_y_log = ref_out(x) + v_log[:, 0:1, :]
    for tt in range(T):
        x = ref_step(x, w_log[:, tt:tt + 1, :])
        if tt > 0:
            ref_x_log = jnp.concatenate((ref_x_log, x), 1)
            ref_y_log = jnp.concatenate((ref_y_log, ref_out(x) + v_log[:, tt:tt + 1, :]), 1)

    assert x_log.shape == (batch, T, STATE_DIM)
    assert y_log.shape == (batch, T, OUT_DIM)
    assert jnp.allclose(x_log, ref_x_log, atol=1e-5, rtol=1e-5), "rollout x_log mismatch"
    assert jnp.allclose(y_log, ref_y_log, atol=1e-5, rtol=1e-5), "rollout y_log mismatch"

    print("KERNEL_OK")
</pallas_src>

<mosaic_0001>
module attributes {stable_mosaic.version = 11 : i64} {
  func.func @_step_kernel(%arg0: i32, %arg1: memref<8x128xf32, #tpu.memory_space<vmem>>, %arg2: memref<8x128xf32, #tpu.memory_space<vmem>>, %arg3: memref<8x128xf32, #tpu.memory_space<vmem>>) attributes {dimension_semantics = [#tpu.dimension_semantics<parallel>], iteration_bounds = array<i64: 1>, scalar_prefetch = 0 : i64, scratch_operands = 0 : i64, tpu.core_type = #tpu.core_type<tc>, window_params = [{transform_indices = @transform_0, window_bounds = array<i64: 8, 128>}, {transform_indices = @transform_1, window_bounds = array<i64: 8, 128>}, {transform_indices = @transform_2, window_bounds = array<i64: 8, 128>}]} {
    %c0 = arith.constant 0 : index
    %c0_0 = arith.constant 0 : index
    %0 = vector.load %arg1[%c0, %c0_0] : memref<8x128xf32, #tpu.memory_space<vmem>>, vector<8x128xf32>
    %1 = tpu.iota {dimensions = array<i32: 1>} : vector<8x128xi32>
    %c2_i32 = arith.constant 2 : i32
    %c0_i32 = arith.constant 0 : i32
    %2 = arith.cmpi eq, %c2_i32, %c0_i32 : i32
    %c1_i32 = arith.constant 1 : i32
    %3 = arith.select %2, %c1_i32, %c2_i32 : i32
    %4 = vector.broadcast %3 : i32 to vector<8x128xi32>
    %5 = arith.remsi %1, %4 : vector<8x128xi32>
    %c0_i32_1 = arith.constant 0 : i32
    %6 = vector.broadcast %c0_i32_1 : i32 to vector<8x128xi32>
    %7 = arith.cmpi ne, %5, %6 : vector<8x128xi32>
    %c0_i32_2 = arith.constant 0 : i32
    %8 = vector.broadcast %c0_i32_2 : i32 to vector<8x128xi32>
    %9 = arith.cmpi slt, %5, %8 : vector<8x128xi32>
    %c0_i32_3 = arith.constant 0 : i32
    %10 = arith.cmpi slt, %3, %c0_i32_3 : i32
    %11 = vector.broadcast %10 : i1 to vector<8x128xi1>
    %12 = vector.broadcast %11 : vector<8x128xi1> to vector<8x128xi1>
    %13 = arith.xori %9, %12 : vector<8x128xi1>
    %14 = arith.andi %13, %7 : vector<8x128xi1>
    %15 = vector.broadcast %3 : i32 to vector<8x128xi32>
    %16 = arith.addi %5, %15 : vector<8x128xi32>
    %17 = arith.select %14, %16, %5 : vector<8x128xi1>, vector<8x128xi32>
    %c0_i32_4 = arith.constant 0 : i32
    %18 = vector.broadcast %c0_i32_4 : i32 to vector<8x128xi32>
    %19 = arith.cmpi eq, %17, %18 : vector<8x128xi32>
    %c1_i32_5 = arith.constant 1 : i32
    %20 = tpu.dynamic_rotate %0 by %c1_i32_5 dim 1 : vector<8x128xf32>, i32 -> vector<8x128xf32>
    %c127_i32 = arith.constant 127 : i32
    %21 = tpu.dynamic_rotate %0 by %c127_i32 dim 1 : vector<8x128xf32>, i32 -> vector<8x128xf32>
    %22 = arith.select %19, %21, %20 : vector<8x128xi1>, vector<8x128xf32>
    %cst = arith.constant 1.000000e-01 : f32
    %23 = vector.broadcast %cst : f32 to vector<8x128xf32>
    %24 = arith.mulf %23, %22 : vector<8x128xf32>
    %25 = arith.addf %0, %24 : vector<8x128xf32>
    %cst_6 = arith.constant 5.000000e-01 : f32
    %26 = vector.broadcast %cst_6 : f32 to vector<8x128xf32>
    %27 = arith.mulf %26, %22 : vector<8x128xf32>
    %cst_7 = arith.constant 2.000000e-01 : f32
    %28 = vector.broadcast %cst_7 : f32 to vector<8x128xf32>
    %29 = arith.mulf %28, %0 : vector<8x128xf32>
    %30 = arith.addf %27, %29 : vector<8x128xf32>
    %cst_8 = arith.constant 1.000000e-01 : f32
    %31 = vector.broadcast %cst_8 : f32 to vector<8x128xf32>
    %32 = arith.mulf %31, %30 : vector<8x128xf32>
    %33 = arith.subf %0, %32 : vector<8x128xf32>
    %34 = arith.select %19, %25, %33 : vector<8x128xi1>, vector<8x128xf32>
    %c0_9 = arith.constant 0 : index
    %c0_10 = arith.constant 0 : index
    %35 = vector.load %arg2[%c0_9, %c0_10] : memref<8x128xf32, #tpu.memory_space<vmem>>, vector<8x128xf32>
    %36 = arith.addf %34, %35 : vector<8x128xf32>
    %c0_11 = arith.constant 0 : index
    %c0_12 = arith.constant 0 : index
    %37 = vector.load %arg3[%c0_11, %c0_12] : memref<8x128xf32, #tpu.memory_space<vmem>>, vector<8x128xf32>
    tpu.vector_store %arg3[%c0_11, %c0_12], %36 {strides = array<i32>} : memref<8x128xf32, #tpu.memory_space<vmem>>, vector<8x128xf32>,
    return
  }
  func.func @transform_0(%arg0: i32) -> (i32, i32) {
    %c0_i32 = arith.constant 0 : i32
    %c0_i32_0 = arith.constant 0 : i32
    return %arg0, %c0_i32 : i32, i32
  }
  func.func @transform_1(%arg0: i32) -> (i32, i32) {
    %c0_i32 = arith.constant 0 : i32
    %c0_i32_0 = arith.constant 0 : i32
    return %arg0, %c0_i32 : i32, i32
  }
  func.func @transform_2(%arg0: i32) -> (i32, i32) {
    %c0_i32 = arith.constant 0 : i32
    %c0_i32_0 = arith.constant 0 : i32
    return %arg0, %c0_i32 : i32, i32
  }
}

</mosaic_0001>

<bundles_post_ra>
// kernel: tpu_custom_call.1
= control target key start
LH: loop header
LB: loop body
LE: loop exit
PB: predicated region body
PF: predicated region fallthrough
CT: control target
= control target key end

     0   :  { %7 = vsyncpa [#allocation3], 0  ;;  %s202_s0 = inlined_call_operand.hbm [shape: f32[8,128], index: 0, kind: input, shape index: {}]   ;;  %s203_s1 = inlined_call_operand.hbm [shape: f32[8,128], index: 1, kind: input, shape index: {}]   ;;  %s204_s2 = inlined_call_operand.hbm [shape: f32[8,128], index: 2, kind: output, shape index: {}]  }
   0x1   :  { %8 = vsyncpa [#allocation6], 0 }
   0x2   :  { %9 = vsyncpa [#allocation4], 0  ;;  %s15_s11 = sshll.u32 %s202_s0, 4  ;;  %s173_s12 = smov [#allocation2]   ;;  %s16_s11 = int_to_ptr.hbm [resolvable:$true] %s15_s11 }
   0x3   :  { %s17_s13 = sshll.u32 %s173_s12, 4  ;;  %s26_s16 = sshll.u32 %s203_s1, 4  ;;  %s18_s13 = int_to_ptr.vmem [resolvable:$true] %s17_s13  ;;  %s27_s16 = int_to_ptr.hbm [resolvable:$true] %s26_s16 }
   0x4   :  { %20 = dma.hbm_to_vmem [thread:$0]  %s16_s11, 128, %s18_s13, [#allocation3]  }
   0x5   :  { %s174_s17 = smov [#allocation5]  }
   0x6   :  { %s28_s18 = sshll.u32 %s174_s17, 4  ;;  %s29_s18 = int_to_ptr.vmem [resolvable:$true] %s28_s18 }
   0x7   :  { %31 = dma.hbm_to_vmem [thread:$0]  %s27_s16, 128, %s29_s18, [#allocation6]  }
   0x8   :  { %167 = dma.done.wait [#allocation3], 128  }
   0x9   :  { %168 = vsyncadd [#allocation3], 4294967168 }
   0xa   :  { %169 = dma.done.wait [#allocation6], 128  }
   0xb   :  { %170 = vsyncadd [#allocation6], 4294967168  ;;  %v40_v0 = vld [vmem:[#allocation2] sm:$0xff]  ;;  %s175_s0 = smov 1   ;;  %s176_s19 = smov 127   ;;  %v41_v1 = vlaneseq  ;;  %v69_v14 = vld [vmem:[#allocation5] sm:$0xff] }
   0xc   :  { %56 = vrot.lane.b32.xlu0 %v40_v0, %s175_s0  ;;  %v64_v6 = vmul.f32 0.2, %v40_v0  ;;  %s177_s1 = smov [#allocation7]   ;;  %s79_s23 = sshll.u32 %s204_s2, 4  ;;  %s80_s23 = int_to_ptr.hbm [resolvable:$true] %s79_s23 }
   0xd   :  { %v42_v2 = vand.u32 127, %v41_v1  ;;  %s77_s20 = sshll.u32 %s177_s1, 4  ;;  %s78_s20 = int_to_ptr.vmem [resolvable:$true] %s77_s20 }
   0xf   :  { %v47_v4 = vand.u32 1, %v42_v2 }
  0x11   :  { %vm55_vm0 = vcmp.eq.s32.totalorder %v47_v4, 0 }
  0x14   :  { %58 = vrot.lane.b32.xlu0 %v40_v0, %s176_s19 }
  0x7e   :  { %v57_v3 = vpop.permute.xlu0 %56 }
  0x86   :  { %v59_v5 = vpop.permute.xlu0 %58 }
  0x87   :  { %v60_v7 = vsel %vm55_vm0, %v59_v5, %v57_v3 }
  0x88   :  { %v63_v8 = vmul.f32 0.5, %v60_v7  ;;  %v61_v9 = vmul.f32 0.1, %v60_v7 }
  0x8a   :  { %v65_v10 = vadd.f32 %v64_v6, %v63_v8  ;;  %v62_v12 = vadd.f32 %v61_v9, %v40_v0 }
  0x8c   :  { %v66_v11 = vmul.f32 0.1, %v65_v10 }
  0x8e   :  { %v67_v13 = vsub.f32 %v40_v0, %v66_v11 }
  0x90   :  { %v68_v15 = vsel %vm55_vm0, %v62_v12, %v67_v13 }
  0x91   :  { %v70_v16 = vadd.f32 %v69_v14, %v68_v15 }
  0x93   :  { %71 = vst [vmem:[#allocation7] sm:$0xff] %v70_v16 }
  0x94   :  { %82 = dma.vmem_to_hbm [thread:$0]  %s78_s20, 128, %s80_s23, [#allocation4]  }
  0x95   :  { %171 = dma.done.wait [#allocation4], 128  }
  0x96   :  { %172 = vsyncadd [#allocation4], 4294967168 }
  0x97   :  { %87 = vsyncpa [#allocation3], 1 }
  0x98   :  { %88 = vsyncpa [#allocation6], 1 }
  0x99   :  { %89 = vsyncpa [#allocation4], 1 }

</bundles_post_ra>
